<compile_context>
chip_gen: v6e
topology: v6e:2x2x1
jax: 0.10.0
libtpu: 0.0.40
codegen_flags: <defaults>
</compile_context>

<pallas_src>
import functools

import jax
import jax.numpy as jnp
from jax import lax
from jax.experimental import pallas as pl
from jax.experimental.pallas import tpu as pltpu


def _round_up(x, m):
    return ((x + m - 1) // m) * m


def _tensorcores_per_chip():
    """Best-effort detection of TensorCores per chip (2 on v7x, else 1)."""
    try:
        kind = jax.devices()[0].device_kind.lower()
    except Exception:
        return 1
    return 2 if ("v7" in kind or "tpu7" in kind) else 1


def _kth_best_cqi_kernel(x_ref, rate_ref, idx_ref, *, kth, eps, t_last, read_full):
    """x_ref: (bt, T, N) if read_full else (bt, N).  rate_ref/idx_ref: (bt, 1)."""
    if read_full:
        x = x_ref[:, t_last, :].astype(jnp.float32)          # (bt, N) last timestep
    else:
        x = x_ref[...].astype(jnp.float32)                   # (bt, N)
    bt, n = x.shape
    lane = lax.broadcasted_iota(jnp.int32, (bt, n), 1)       # (bt, N) lane indices

    # Iterative masked-min extraction.  Each pass removes exactly ONE
    # occurrence of the current row minimum (the smallest-index one, matching
    # a stable sort), so duplicates are counted correctly.  kth - 1 <= 3
    # passes, statically unrolled; only (bt, N) state is live.
    work = x
    for _ in range(kth - 1):
        cur_min = jnp.min(work, axis=1, keepdims=True)                        # (bt, 1)
        is_min = work == cur_min
        arg = jnp.min(jnp.where(is_min, lane, n), axis=1, keepdims=True)      # (bt, 1)
        work = jnp.where(lane == arg, jnp.inf, work)

    selected = jnp.min(work, axis=1, keepdims=True)                           # (bt, 1)
    is_sel = work == selected
    selected_idx = jnp.min(jnp.where(is_sel, lane, n), axis=1, keepdims=True)  # (bt, 1)

    rate_ref[...] = (1.0 - eps) * jnp.log2(1.0 + selected)
    idx_ref[...] = selected_idx


def _kth_best_cqi_ref(x_cqi, *, kth, epsilon):
    """Fused pure-JAX path (also serves as the tiny-problem fallback)."""
    x = x_cqi[:, -1, :].astype(jnp.float32)
    order = jnp.argsort(x, axis=-1)
    sel_idx = order[:, kth - 1]
    sel = jnp.take_along_axis(x, sel_idx[:, None], axis=-1)[:, 0]
    rate = (1.0 - epsilon) * jnp.log2(1.0 + sel)
    return rate, sel_idx.astype(jnp.int32)


def kth_best_cqi(inputs, *, k, epsilon, force_pallas=False, max_rows_per_tile=None,
                 vmem_budget_bytes=24 * 1024 * 1024, small_problem_threshold=16 * 1024):
    """Pallas equivalent of kthBestCQI.forward(inputs) -> (rate, selected_idx)."""
    x_cqi = inputs[0]                                   # (B, T, N)
    B, T, N = x_cqi.shape
    kth = 5 - k                                         # torch.kthvalue is 1-indexed
    assert 1 <= kth <= N, "5 - k must be a valid 1-indexed rank"

    # Tiny-problem fallback: custom-call launch + one grid step (microseconds)
    # dwarfs the nanoseconds of actual work at the module's native shapes.
    if not force_pallas and B * N < small_problem_threshold:
        return _kth_best_cqi_ref(x_cqi, kth=kth, epsilon=epsilon)

    itemsize = x_cqi.dtype.itemsize

    # Contiguous full-(bt, T, N) read when one time-row is small; otherwise
    # keep the fused strided x[:, -1, :] slice in the BlockSpec.
    read_full = (T * N * itemsize) <= 4096

    # VMEM bytes per batch row of the *padded* input block (minor dim padded
    # to 128 lanes, second-minor to 8 sublanes) -- used to size the tile.
    if read_full:
        vmem_row = _round_up(T, 8) * _round_up(N, 128) * itemsize
    else:
        vmem_row = _round_up(N, 128) * itemsize

    # Batch tile: as large as the double-buffered VMEM budget allows.
    bt = min(B, max(8, vmem_budget_bytes // (2 * vmem_row)))
    if max_rows_per_tile is not None:
        bt = min(bt, max_rows_per_tile)
    if bt < B:
        bt = max(8, (bt // 8) * 8)

    # v7x (2 TensorCores): guarantee >= n_cores grid steps so the "parallel"
    # batch axis can shard across cores; v5e/v6e keep the step count minimal.
    n_cores = _tensorcores_per_chip()
    if n_cores > 1 and B >= 16 * n_cores and pl.cdiv(B, bt) < n_cores:
        bt = max(8, _round_up(pl.cdiv(B, n_cores), 8))

    grid = (pl.cdiv(B, bt),)

    # Derived VMEM cap: double-buffered input block + padded outputs + slack,
    # well under v7x's 64 MiB physical VMEM.
    in_block_bytes = bt * vmem_row
    out_pad_bytes = _round_up(bt, 8) * 128 * 4           # one (bt, 1) block, padded
    vmem_limit = int(min(40 * 1024 * 1024,
                         max(4 * 1024 * 1024,
                             2 * in_block_bytes + 4 * out_pad_bytes + 2 * 1024 * 1024)))

    if read_full:
        in_spec = pl.BlockSpec((bt, T, N), lambda i: (i, 0, 0))
    else:
        # Time dim squeezed and pinned to T-1 (strided last-timestep DMA).
        in_spec = pl.BlockSpec((bt, None, N), lambda i: (i, T - 1, 0))

    kernel = functools.partial(_kth_best_cqi_kernel, kth=kth, eps=float(epsilon),
                               t_last=T - 1, read_full=read_full)

    rate, idx = pl.pallas_call(
        kernel,
        out_shape=(
            jax.ShapeDtypeStruct((B, 1), jnp.float32),
            jax.ShapeDtypeStruct((B, 1), jnp.int32),
        ),
        grid=grid,
        in_specs=[in_spec],
        out_specs=(
            pl.BlockSpec((bt, 1), lambda i: (i, 0)),
            pl.BlockSpec((bt, 1), lambda i: (i, 0)),
        ),
        compiler_params=pltpu.CompilerParams(
            dimension_semantics=("parallel",),
            vmem_limit_bytes=vmem_limit,
        ),
    )(x_cqi)

    return rate[:, 0], idx[:, 0]


if __name__ == "__main__":
    # cfg-like constants (deterministic, in-script)
    k = 2
    epsilon = 0.1

    key = jax.random.PRNGKey(0)
    k1, k2 = jax.random.split(key)

    # (1) a3c-sized shapes (batch=2, time=8, num_rb=8): force the Pallas path
    #     (the default dispatch would take the tiny-problem JAX fallback here).
    B, T, N = 2, 8, 8
    x1 = jax.random.uniform(k1, (B, T, N), dtype=jnp.float32, minval=0.1, maxval=10.0)
    rate1, idx1 = kth_best_cqi((x1,), k=k, epsilon=epsilon, force_pallas=True)
    jax.block_until_ready((rate1, idx1))
    r_ref1, i_ref1 = _kth_best_cqi_ref(x1, kth=5 - k, epsilon=epsilon)
    assert jnp.allclose(rate1, r_ref1, rtol=1e-5, atol=1e-5), (rate1, r_ref1)
    assert jnp.array_equal(idx1, i_ref1.astype(idx1.dtype)), (idx1, i_ref1)

    # (2) larger batch: exercises a multi-step grid and a partial last tile.
    B2, T2, N2 = 300, 8, 16
    x2 = jax.random.uniform(k2, (B2, T2, N2), dtype=jnp.float32, minval=0.1, maxval=10.0)
    rate2, idx2 = kth_best_cqi((x2,), k=k, epsilon=epsilon, force_pallas=True,
                               max_rows_per_tile=128)
    jax.block_until_ready((rate2, idx2))
    r_ref2, i_ref2 = _kth_best_cqi_ref(x2, kth=5 - k, epsilon=epsilon)
    assert jnp.allclose(rate2, r_ref2, rtol=1e-5, atol=1e-5), (rate2, r_ref2)
    assert jnp.array_equal(idx2, i_ref2.astype(idx2.dtype)), (idx2, i_ref2)

    # (3) default dispatch at the module's true tiny shapes uses the fused
    #     JAX fallback (avoids a guaranteed regression vs custom-call launch).
    rate3, idx3 = kth_best_cqi((x1,), k=k, epsilon=epsilon)
    jax.block_until_ready((rate3, idx3))
    assert jnp.allclose(rate3, r_ref1, rtol=1e-5, atol=1e-5)

    print("KERNEL_OK")
</pallas_src>

<mosaic_0001>
module attributes {stable_mosaic.version = 11 : i64} {
  func.func @_kth_best_cqi_kernel(%arg0: i32, %arg1: memref<2x8x8xf32, #tpu.memory_space<vmem>>, %arg2: memref<2x1xf32, #tpu.memory_space<vmem>>, %arg3: memref<2x1xi32, #tpu.memory_space<vmem>>) attributes {dimension_semantics = [#tpu.dimension_semantics<parallel>], iteration_bounds = array<i64: 1>, scalar_prefetch = 0 : i64, scratch_operands = 0 : i64, tpu.core_type = #tpu.core_type<tc>, window_params = [{transform_indices = @transform_0, window_bounds = array<i64: 2, 8, 8>}, {transform_indices = @transform_1, window_bounds = array<i64: 2, 1>}, {transform_indices = @transform_2, window_bounds = array<i64: 2, 1>}]} {
    %c0 = arith.constant 0 : index
    %c7 = arith.constant 7 : index
    %c0_0 = arith.constant 0 : index
    %0 = vector.load %arg1[%c0, %c7, %c0_0] : memref<2x8x8xf32, #tpu.memory_space<vmem>>, vector<2x1x8xf32>
    %1 = vector.shape_cast %0 : vector<2x1x8xf32> to vector<2x8xf32>
    %2 = tpu.iota {dimensions = array<i32: 1>} : vector<2x8xi32>
    %cst = arith.constant dense<0x7F800000> : vector<2xf32>
    %3 = vector.multi_reduction <minimumf>, %1, %cst [1] : vector<2x8xf32> to vector<2xf32>
    %4 = vector.shape_cast %3 : vector<2xf32> to vector<2x1xf32>
    %5 = vector.broadcast %4 : vector<2x1xf32> to vector<2x8xf32>
    %6 = arith.cmpf oeq, %1, %5 : vector<2x8xf32>
    %c8_i32 = arith.constant 8 : i32
    %7 = vector.broadcast %c8_i32 : i32 to vector<2x8xi32>
    %8 = arith.select %6, %2, %7 : vector<2x8xi1>, vector<2x8xi32>
    %cst_1 = arith.constant dense<2147483647> : vector<2xi32>
    %9 = vector.multi_reduction <minsi>, %8, %cst_1 [1] : vector<2x8xi32> to vector<2xi32>
    %10 = vector.shape_cast %9 : vector<2xi32> to vector<2x1xi32>
    %11 = vector.broadcast %10 : vector<2x1xi32> to vector<2x8xi32>
    %12 = arith.cmpi eq, %2, %11 : vector<2x8xi32>
    %cst_2 = arith.constant 0x7F800000 : f32
    %13 = vector.broadcast %cst_2 : f32 to vector<2x8xf32>
    %14 = arith.select %12, %13, %1 : vector<2x8xi1>, vector<2x8xf32>
    %cst_3 = arith.constant dense<0x7F800000> : vector<2xf32>
    %15 = vector.multi_reduction <minimumf>, %14, %cst_3 [1] : vector<2x8xf32> to vector<2xf32>
    %16 = vector.shape_cast %15 : vector<2xf32> to vector<2x1xf32>
    %17 = vector.broadcast %16 : vector<2x1xf32> to vector<2x8xf32>
    %18 = arith.cmpf oeq, %14, %17 : vector<2x8xf32>
    %c8_i32_4 = arith.constant 8 : i32
    %19 = vector.broadcast %c8_i32_4 : i32 to vector<2x8xi32>
    %20 = arith.select %18, %2, %19 : vector<2x8xi1>, vector<2x8xi32>
    %cst_5 = arith.constant dense<2147483647> : vector<2xi32>
    %21 = vector.multi_reduction <minsi>, %20, %cst_5 [1] : vector<2x8xi32> to vector<2xi32>
    %22 = vector.shape_cast %21 : vector<2xi32> to vector<2x1xi32>
    %23 = vector.broadcast %22 : vector<2x1xi32> to vector<2x8xi32>
    %24 = arith.cmpi eq, %2, %23 : vector<2x8xi32>
    %cst_6 = arith.constant 0x7F800000 : f32
    %25 = vector.broadcast %cst_6 : f32 to vector<2x8xf32>
    %26 = arith.select %24, %25, %14 : vector<2x8xi1>, vector<2x8xf32>
    %cst_7 = arith.constant dense<0x7F800000> : vector<2xf32>
    %27 = vector.multi_reduction <minimumf>, %26, %cst_7 [1] : vector<2x8xf32> to vector<2xf32>
    %28 = vector.shape_cast %27 : vector<2xf32> to vector<2x1xf32>
    %29 = vector.broadcast %28 : vector<2x1xf32> to vector<2x8xf32>
    %30 = arith.cmpf oeq, %26, %29 : vector<2x8xf32>
    %c8_i32_8 = arith.constant 8 : i32
    %31 = vector.broadcast %c8_i32_8 : i32 to vector<2x8xi32>
    %32 = arith.select %30, %2, %31 : vector<2x8xi1>, vector<2x8xi32>
    %cst_9 = arith.constant dense<2147483647> : vector<2xi32>
    %33 = vector.multi_reduction <minsi>, %32, %cst_9 [1] : vector<2x8xi32> to vector<2xi32>
    %34 = vector.shape_cast %33 : vector<2xi32> to vector<2x1xi32>
    %cst_10 = arith.constant 1.000000e+00 : f32
    %35 = vector.broadcast %cst_10 : f32 to vector<2x1xf32>
    %36 = arith.addf %35, %28 : vector<2x1xf32>
    %37 = math.log %36 : vector<2x1xf32>
    %cst_11 = arith.constant 2.000000e+00 : f32
    %38 = math.log %cst_11 : f32
    %39 = vector.broadcast %38 : f32 to vector<2x1xf32>
    %40 = arith.divf %37, %39 : vector<2x1xf32>
    %cst_12 = arith.constant 0.899999976 : f32
    %41 = vector.broadcast %cst_12 : f32 to vector<2x1xf32>
    %42 = arith.mulf %41, %40 : vector<2x1xf32>
    %c0_13 = arith.constant 0 : index
    %c0_14 = arith.constant 0 : index
    %43 = vector.load %arg2[%c0_13, %c0_14] : memref<2x1xf32, #tpu.memory_space<vmem>>, vector<2x1xf32>
    tpu.vector_store %arg2[%c0_13, %c0_14], %42 {strides = array<i32>} : memref<2x1xf32, #tpu.memory_space<vmem>>, vector<2x1xf32>,
    %c0_15 = arith.constant 0 : index
    %c0_16 = arith.constant 0 : index
    %44 = vector.load %arg3[%c0_15, %c0_16] : memref<2x1xi32, #tpu.memory_space<vmem>>, vector<2x1xi32>
    tpu.vector_store %arg3[%c0_15, %c0_16], %34 {strides = array<i32>} : memref<2x1xi32, #tpu.memory_space<vmem>>, vector<2x1xi32>,
    return
  }
  func.func @transform_0(%arg0: i32) -> (i32, i32, i32) {
    %c0_i32 = arith.constant 0 : i32
    %c0_i32_0 = arith.constant 0 : i32
    %c0_i32_1 = arith.constant 0 : i32
    return %arg0, %c0_i32, %c0_i32_0 : i32, i32, i32
  }
  func.func @transform_1(%arg0: i32) -> (i32, i32) {
    %c0_i32 = arith.constant 0 : i32
    %c0_i32_0 = arith.constant 0 : i32
    return %arg0, %c0_i32 : i32, i32
  }
  func.func @transform_2(%arg0: i32) -> (i32, i32) {
    %c0_i32 = arith.constant 0 : i32
    %c0_i32_0 = arith.constant 0 : i32
    return %arg0, %c0_i32 : i32, i32
  }
}

</mosaic_0001>

<bundles_post_ra>
// kernel: tpu_custom_call.1
= control target key start
LH: loop header
LB: loop body
LE: loop exit
PB: predicated region body
PF: predicated region fallthrough
CT: control target
= control target key end

     0   :  { %8 = vsyncpa [#allocation3], 0  ;;  %s152_s9 = smov [#allocation2]   ;;  %s185_s0 = inlined_call_operand.hbm [shape: f32[2,8,8], index: 0, kind: input, shape index: {}]   ;;  %s186_s1 = inlined_call_operand.vmem [shape: f32[2,1], index: 1, kind: output, shape index: {0}]   ;;  %s187_s2 = inlined_call_operand.vmem [shape: s32[2,1], index: 2, kind: output, shape index: {1}]  }
   0x1   :  { %s14_s10 = sshll.u32 %s152_s9, 4  ;;  %s15_s10 = int_to_ptr.vmem [resolvable:$true] %s14_s10 }
   0x2   :  { %s138_s11 = scalar_lea.vmem %s15_s10, 256  ;;  %p143_p1 = scmp.lt.s32.totalorder %s15_s10, %s15_s10 }
   0x3   :  { %p139_p0 = scmp.ne.s32.totalorder %s15_s10, %s138_s11  ;;  %p144_p2 = scmp.lt.s32.totalorder %s138_s11, %s138_s11 }
   0x5   :  { %p145_p3 = por %p144_p2, %p143_p1 }
   0x7   :  { %p146_p4 = pnand %p145_p3, %p139_p0 }
   0x9   :  { %149 = shalt.err (!%p146_p4)
}
   0xa   :  { %s153_s12 = smov 128   ;;  %s154_s13 = smov 8  }
   0xb   :  { %20 = dma.hbm_to_vmem [thread:$0]  %s185_s0, 256, %s15_s10, [#allocation3], %s153_s12, %s153_s12, %s154_s13  }
   0xc   :  { %150 = dma.done.wait [#allocation3], 256  }
   0xd   :  { %151 = vsyncadd [#allocation3], 4294967040  ;;  %v24_v0 = vld [vmem:[#allocation2 + $0x7] sm:$0x1]  ;;  %v25_v1 = vld [vmem:[#allocation2 + $0xf] sm:$0x1]  ;;  %v26_v5 = vlaneseq }
   0xe   :  { %vm31_vm0 = vcmask 1041409   ;;  %v30_v2 = vrot.slane %v25_v1, 7  ;;  %vm34_vm1 = vcmask 58368   ;;  %vm113_vm10 = vcmask 1024  }
   0xf   :  { %v27_v8 = vand.u32 127, %v26_v5 }
  0x10   :  { %v32_v3 = vsel %vm31_vm0, %v30_v2, %v24_v0 }
  0x11   :  { %v35_v4 = vsel %vm34_vm1, %v32_v3, inf }
  0x12   :  { %36 = vmin.xlane.f32.xlu0 %v35_v4 }
  0x9b   :  { %v37_v6 = vpop.xlane.xlu0 %36 }
  0x9c   :  { %v39_v7 = vrot.slane %v37_v6, 1  ;;  %vm42_vm2 = vcmp.eq.f32.partialorder %v24_v0, %v37_v6 }
  0x9d   :  { %v44_v11 = vsel %vm42_vm2, %v27_v8, 8 }
  0x9e   :  { %vm43_vm3 = vcmp.eq.f32.partialorder %v25_v1, %v39_v7 }
  0x9f   :  { %v45_v9 = vsel %vm43_vm3, %v27_v8, 8 }
  0xa0   :  { %v46_v10 = vrot.slane %v45_v9, 7 }
  0xa2   :  { %v47_v12 = vsel %vm31_vm0, %v46_v10, %v44_v11 }
  0xa3   :  { %v48_v13 = vsel %vm34_vm1, %v47_v12, 2147483647 }
  0xa4   :  { %v50_v14 = vshra.s32 %v48_v13, 16  ;;  %v49_v16 = vand.u32 65535, %v48_v13 }
  0xa6   :  { %v52_v15 = vcvt.s32.f32 %v50_v14  ;;  %v51_v18 = vcvt.s32.f32 %v49_v16 }
  0xa8   :  { %53 = vmin.xlane.f32.xlu0 %v52_v15 }
 0x131   :  { %v54_v17 = vpop.xlane.xlu0 %53 }
 0x132   :  { %vm55_vm4 = vcmp.eq.f32.partialorder %v52_v15, %v54_v17  ;;  %v60_v20 = vcvt.f32.s32 %v54_v17 }
 0x133   :  { %v56_v19 = vsel %vm55_vm4, %v51_v18, inf }
 0x134   :  { %57 = vmin.xlane.f32.xlu1 %v56_v19  ;;  %v61_v22 = vshll.u32 %v60_v20, 16 }
 0x1bd   :  { %v58_v21 = vpop.xlane.xlu1 %57 }
 0x1be   :  { %v59_v23 = vcvt.f32.s32 %v58_v21 }
 0x1c0   :  { %v62_v24 = vadd.s32 %v61_v22, %v59_v23 }
 0x1c2   :  { %vm63_vm5 = vcmp.eq.s32.totalorder %v27_v8, %v62_v24 }
 0x1c3   :  { %v64_v25 = vsel %vm63_vm5, inf, %v32_v3 }
 0x1c4   :  { %v65_v26 = vsel %vm34_vm1, %v64_v25, inf }
 0x1c5   :  { %66 = vmin.xlane.f32.xlu1 %v65_v26 }
 0x24e   :  { %v67_v27 = vpop.xlane.xlu1 %66 }
 0x24f   :  { %vm68_vm6 = vcmp.eq.f32.partialorder %v64_v25, %v67_v27 }
 0x250   :  { %v69_v28 = vsel %vm68_vm6, %v27_v8, 8 }
 0x251   :  { %v70_v29 = vsel %vm34_vm1, %v69_v28, 2147483647 }
 0x252   :  { %v72_v30 = vshra.s32 %v70_v29, 16  ;;  %v71_v32 = vand.u32 65535, %v70_v29 }
 0x254   :  { %v74_v31 = vcvt.s32.f32 %v72_v30  ;;  %v73_v34 = vcvt.s32.f32 %v71_v32 }
 0x256   :  { %75 = vmin.xlane.f32.xlu0 %v74_v31 }
 0x2df   :  { %v76_v33 = vpop.xlane.xlu0 %75 }
 0x2e0   :  { %vm77_vm7 = vcmp.eq.f32.partialorder %v74_v31, %v76_v33  ;;  %v82_v36 = vcvt.f32.s32 %v76_v33 }
 0x2e1   :  { %v78_v35 = vsel %vm77_vm7, %v73_v34, inf }
 0x2e2   :  { %79 = vmin.xlane.f32.xlu1 %v78_v35  ;;  %v83_v38 = vshll.u32 %v82_v36, 16 }
 0x36b   :  { %v80_v37 = vpop.xlane.xlu1 %79 }
 0x36c   :  { %v81_v39 = vcvt.f32.s32 %v80_v37 }
 0x36e   :  { %v84_v40 = vadd.s32 %v83_v38, %v81_v39 }
 0x370   :  { %vm85_vm8 = vcmp.eq.s32.totalorder %v27_v8, %v84_v40 }
 0x371   :  { %v86_v41 = vsel %vm85_vm8, inf, %v64_v25 }
 0x372   :  { %v87_v42 = vsel %vm34_vm1, %v86_v41, inf }
 0x373   :  { %88 = vmin.xlane.f32.xlu0 %v87_v42 }
 0x3fc   :  { %v89_v43 = vpop.xlane.xlu0 %88 }
 0x3fd   :  { %vm90_vm9 = vcmp.eq.f32.partialorder %v86_v41, %v89_v43  ;;  %v107_v44 = vadd.f32 1.0, %v89_v43 }
 0x3fe   :  { %v91_v45 = vsel %vm90_vm9, %v27_v8, 8 }
 0x3ff   :  { %128 = vlog2.f32 %v107_v44  ;;  %v92_v46 = vsel %vm34_vm1, %v91_v45, 2147483647 }
 0x400   :  { %v94_v47 = vshra.s32 %v92_v46, 16  ;;  %v93_v53 = vand.u32 65535, %v92_v46 }
 0x402   :  { %v96_v48 = vcvt.s32.f32 %v94_v47  ;;  %v95_v55 = vcvt.s32.f32 %v93_v53 }
 0x404   :  { %97 = vmin.xlane.f32.xlu1 %v96_v48 }
 0x40c   :  { %v129_v49 = vpop.eup %128 }
 0x40d   :  { %v109_v50 = vmul.f32 0.6931472, %v129_v49 }
 0x40f   :  { %v111_v51 = vmul.f32 1.442695, %v109_v50 }
 0x411   :  { %v112_v52 = vmul.f32 0.9, %v111_v51 }
 0x413   :  { %114 = vst.msk [vmem:[%s186_s1] sm:$0x3] %vm113_vm10, %v112_v52 }
 0x48d   :  { %v98_v54 = vpop.xlane.xlu1 %97 }
 0x48e   :  { %vm99_vm11 = vcmp.eq.f32.partialorder %v96_v48, %v98_v54  ;;  %v104_v57 = vcvt.f32.s32 %v98_v54 }
 0x48f   :  { %v100_v56 = vsel %vm99_vm11, %v95_v55, inf }
 0x490   :  { %101 = vmin.xlane.f32.xlu0 %v100_v56  ;;  %v105_v59 = vshll.u32 %v104_v57, 16 }
 0x519   :  { %v102_v58 = vpop.xlane.xlu0 %101 }
 0x51a   :  { %v103_v60 = vcvt.f32.s32 %v102_v58 }
 0x51c   :  { %v106_v61 = vadd.s32 %v105_v59, %v103_v60 }
 0x51e   :  { %115 = vst.msk [vmem:[%s187_s2] sm:$0x3] %vm113_vm10, %v106_v61 }
 0x51f   :  { %124 = vsyncpa [#allocation3], 1 }

</bundles_post_ra>
